<compile_context>
chip_gen: v6e
topology: v6e:2x2x1
jax: 0.10.0
libtpu: 0.0.40
codegen_flags: <defaults>
</compile_context>

<pallas_src>
import functools

import jax
import jax.numpy as jnp
from jax.experimental import pallas as pl
from jax.experimental.pallas import tpu as pltpu


_UNROLL = 8                                  # manual unroll of per-row loops
_VMEM_TABLE_BYTES_MAX = 8 * 1024 * 1024      # fast-path (table in VMEM) cutoff
_TILE_BYTES_TARGET = 2 * 1024 * 1024         # per (block_n, D) tile budget
_MAX_PREFETCH_IDS = 1 << 16                  # <= 256 KiB of SMEM for indices


def _vmem_gather_kernel(idx_ref, w_ref, out_ref):
    """Small-table path: whole weight table resident in VMEM.

    idx_ref : SMEM (n_pad,) int32   -- scalar-prefetched flat indices
    w_ref   : VMEM (V, D)           -- full table, constant block index
    out_ref : VMEM (block_n, D)     -- pipelined output tile
    """
    bn = out_ref.shape[0]
    base = pl.program_id(0) * bn

    def body(j, carry):
        r0 = pl.multiple_of(j * _UNROLL, _UNROLL)
        for u in range(_UNROLL):                      # manual x8 unroll
            r = r0 + u
            row = idx_ref[base + r]
            out_ref[pl.ds(r, 1), :] = w_ref[pl.ds(row, 1), :]
        return carry

    jax.lax.fori_loop(0, bn // _UNROLL, body, 0)


def _hbm_gather_kernel(idx_ref, w_hbm, out_ref, buf, sem):
    """Large-table path: per-row DMA gather from HBM, double-buffered.

    idx_ref : SMEM (n_pad,) int32   -- scalar-prefetched flat indices
    w_hbm   : HBM  (V, D)           -- full embedding table, never in VMEM
    out_ref : VMEM (block_n, D)     -- pipelined output tile
    buf     : VMEM (2, block_n, D)  -- double-buffered gather landing zone
    sem     : DMA semaphores (2,)   -- one per buffer slot
    """
    bn = out_ref.shape[0]
    step = pl.program_id(1)
    inner = pl.num_programs(1)
    blk = pl.program_id(0) * inner + step            # global block index
    slot = step % 2

    def issue(block, to_slot):
        base = block * bn

        def body(j, carry):
            r0 = pl.multiple_of(j * _UNROLL, _UNROLL)
            for u in range(_UNROLL):                  # manual x8 unroll
                r = r0 + u
                row = idx_ref[base + r]
                pltpu.make_async_copy(
                    w_hbm.at[row], buf.at[to_slot, r], sem.at[to_slot]
                ).start()
            return carry

        jax.lax.fori_loop(0, bn // _UNROLL, body, 0)

    # Prime the pipeline with this core's first block.
    @pl.when(step == 0)
    def _():
        issue(blk, 0)

    # Prefetch the next block BEFORE waiting on the current slot, so its DMAs
    # overlap the entire current-block wait (and the SMEM index reads stay
    # ahead of the DMA wait, preserving sst->sld forwarding).
    @pl.when(step + 1 < inner)
    def _():
        issue(blk + 1, 1 - slot)

    # Single block-sized wait: the bn row copies into buf[slot] signal
    # sem[slot] with bn*D*itemsize bytes in total; one descriptor of exactly
    # that size waits for all of them (replaces bn serialized waits).
    pltpu.make_async_copy(buf.at[slot], buf.at[slot], sem.at[slot]).wait()

    # Hand the gathered tile to the output write-back pipeline.
    # TODO(synk): for very large block_n*D this vector copy could itself be a
    # local async copy to free vld/vst slots; negligible at these tile sizes.
    out_ref[...] = buf[slot]


def _vmem_limit(needed_bytes):
    # Generous but always <= 32 MiB so it is valid on v5e/v6e/v7x alike.
    return int(min(max(needed_bytes + (8 << 20), 16 << 20), 32 << 20))


def _pick_block_n(n, dim, itemsize):
    bn = _TILE_BYTES_TARGET // max(1, dim * itemsize)
    bn = max(_UNROLL, min(1024, bn))
    bn = (bn // _UNROLL) * _UNROLL
    # Don't tile far beyond the problem size.
    n_up = ((n + _UNROLL - 1) // _UNROLL) * _UNROLL
    return int(max(_UNROLL, min(bn, n_up)))


def _gather_chunk(flat, weight, bn, use_vmem_path):
    """Gather weight[flat] for one (<= _MAX_PREFETCH_IDS) chunk of indices."""
    n = flat.shape[0]
    vocab, dim = weight.shape
    itemsize = jnp.dtype(weight.dtype).itemsize

    if use_vmem_path:
        nblocks = pl.cdiv(n, bn)
        n_pad = nblocks * bn
        flat = jnp.pad(flat, (0, n_pad - n))          # padded tail -> row 0
        need = 2 * vocab * dim * itemsize + 4 * bn * dim * itemsize
        out = pl.pallas_call(
            _vmem_gather_kernel,
            out_shape=jax.ShapeDtypeStruct((n_pad, dim), weight.dtype),
            grid_spec=pltpu.PrefetchScalarGridSpec(
                num_scalar_prefetch=1,                    # indices -> SMEM
                grid=(nblocks,),
                # Whole table, constant block index -> loaded once, resident.
                in_specs=[pl.BlockSpec((vocab, dim), lambda i, idx: (0, 0))],
                out_specs=pl.BlockSpec((bn, dim), lambda i, idx: (i, 0)),
            ),
            compiler_params=pltpu.CompilerParams(
                dimension_semantics=("parallel",),        # megacore splits grid
                vmem_limit_bytes=_vmem_limit(need),
            ),
        )(flat, weight)
        return out[:n]

    # HBM DMA-gather path.
    nblocks = pl.cdiv(n, bn)
    ncores = 2 if nblocks >= 4 else 1                 # v7x dual-TC split
    nblocks = pl.cdiv(nblocks, ncores) * ncores
    inner = nblocks // ncores
    n_pad = nblocks * bn
    flat = jnp.pad(flat, (0, n_pad - n))              # padded tail -> row 0
    need = 4 * bn * dim * itemsize
    out = pl.pallas_call(
        _hbm_gather_kernel,
        out_shape=jax.ShapeDtypeStruct((n_pad, dim), weight.dtype),
        grid_spec=pltpu.PrefetchScalarGridSpec(
            num_scalar_prefetch=1,                        # indices -> SMEM
            grid=(ncores, inner),
            in_specs=[pl.BlockSpec(memory_space=pl.ANY)],  # weight stays in HBM
            out_specs=pl.BlockSpec(
                (bn, dim), lambda c, i, idx: (c * inner + i, 0)),
            scratch_shapes=[
                pltpu.VMEM((2, bn, dim), weight.dtype),
                pltpu.SemaphoreType.DMA((2,)),
            ],
        ),
        compiler_params=pltpu.CompilerParams(
            # DMA slot state is carried along the inner axis (sequential per
            # core); the leading axis splits the token range across cores.
            dimension_semantics=("parallel", "arbitrary"),
            vmem_limit_bytes=_vmem_limit(need),
        ),
    )(flat, weight)
    return out[:n]


@functools.partial(jax.jit, static_argnames=("block_n", "force_hbm_gather"))
def custom_embedding(ind, weight, block_n=None, force_hbm_gather=False):
    """Pallas equivalent of CustomEmbedding.forward: weight[ind]."""
    vocab, dim = weight.shape
    ind_shape = ind.shape

    flat = ind.reshape(-1).astype(jnp.int32)
    n = flat.shape[0]
    if n == 0:
        return jnp.zeros((*ind_shape, dim), weight.dtype)

    # Torch advanced indexing wraps negative indices; clamp everything else so
    # DMA / VMEM addressing always stays in-bounds.
    flat = jnp.where(flat < 0, flat + vocab, flat)
    flat = jnp.clip(flat, 0, vocab - 1)

    itemsize = jnp.dtype(weight.dtype).itemsize
    use_vmem_path = (not force_hbm_gather) and (
        vocab * dim * itemsize <= _VMEM_TABLE_BYTES_MAX)

    if block_n is None:
        bn = _pick_block_n(min(n, _MAX_PREFETCH_IDS), dim, itemsize)
    else:
        assert block_n % _UNROLL == 0, "block_n must be a multiple of 8"
        bn = int(block_n)

    # Chunk long index vectors so the scalar-prefetched indices stay small in
    # SMEM (SMEM padding is next_pow2(4 * n_pad) bytes).
    pieces = []
    for s in range(0, n, _MAX_PREFETCH_IDS):
        chunk = flat[s:min(s + _MAX_PREFETCH_IDS, n)]
        pieces.append(_gather_chunk(chunk, weight, bn, use_vmem_path))
    emb_flat = pieces[0] if len(pieces) == 1 else jnp.concatenate(pieces, 0)

    return emb_flat.reshape(*ind_shape, dim)


def init_custom_embedding(key, inp, out, padding_idx=None, dtype=jnp.float32):
    weight = jax.random.normal(key, (inp, out), dtype=dtype)
    if padding_idx is not None:
        weight = weight.at[padding_idx].set(0.0)
    return weight


if __name__ == "__main__":
    key = jax.random.PRNGKey(0)
    k_w, k_i, k_j = jax.random.split(key, 3)

    inp, out = 64, 128          # vocab size, embedding dim
    padding_idx = 0
    batch, seq = 2, 8           # indices shape (2, 8)

    weight = init_custom_embedding(k_w, inp, out, padding_idx=padding_idx)
    ind = jax.random.randint(k_i, (batch, seq), 0, inp, dtype=jnp.int32)

    # 1) Small-table VMEM-resident fast path (the demo configuration).
    emb = jax.block_until_ready(custom_embedding(ind, weight))
    ref = jnp.take(weight, ind.reshape(-1), axis=0).reshape(batch, seq, out)
    assert emb.shape == (batch, seq, out), emb.shape
    assert emb.dtype == weight.dtype
    assert jnp.array_equal(emb, ref)

    # 2) HBM DMA-gather path (forced), exercising priming / hoisted prefetch /
    #    single-wait double-buffering and the 2-core grid split.
    ind2 = jax.random.randint(k_j, (4, 96), 0, inp, dtype=jnp.int32)
    emb2 = jax.block_until_ready(
        custom_embedding(ind2, weight, block_n=64, force_hbm_gather=True))
    ref2 = jnp.take(weight, ind2.reshape(-1), axis=0).reshape(4, 96, out)
    assert emb2.shape == (4, 96, out), emb2.shape
    assert jnp.array_equal(emb2, ref2)

    print("KERNEL_OK")
</pallas_src>

<mosaic_0001>
module attributes {stable_mosaic.version = 11 : i64} {
  func.func @_vmem_gather_kernel(%arg0: i32, %arg1: memref<16xi32, #tpu.memory_space<smem>>, %arg2: memref<64x128xf32, #tpu.memory_space<vmem>>, %arg3: memref<16x128xf32, #tpu.memory_space<vmem>>) attributes {dimension_semantics = [#tpu.dimension_semantics<parallel>], iteration_bounds = array<i64: 1>, scalar_prefetch = 1 : i64, scratch_operands = 0 : i64, tpu.core_type = #tpu.core_type<tc>, window_params = [{pipeline_mode = #tpu.pipeline_mode<synchronous>, transform_indices = @transform_0, window_bounds = array<i64: 64, 128>}, {transform_indices = @transform_1, window_bounds = array<i64: 16, 128>}]} {
    %c16_i32 = arith.constant 16 : i32
    %0 = arith.muli %arg0, %c16_i32 : i32
    %c0_i32 = arith.constant 0 : i32
    %c2_i32 = arith.constant 2 : i32
    %1 = arith.addi %c0_i32, %c2_i32 : i32
    %c1_i32 = arith.constant 1 : i32
    scf.for %arg4 = %c0_i32 to %1 step %c1_i32  : i32 {
      %c8_i32 = arith.constant 8 : i32
      %2 = arith.muli %arg4, %c8_i32 : i32
      %3 = tpu.assume_multiple %2, 8 : i32
      %c0_i32_1 = arith.constant 0 : i32
      %4 = arith.addi %3, %c0_i32_1 : i32
      %5 = arith.addi %0, %4 : i32
      %6 = arith.index_cast %5 : i32 to index
      %7 = memref.load %arg1[%6] : memref<16xi32, #tpu.memory_space<smem>>
      %8 = arith.index_cast %7 : i32 to index
      %c0 = arith.constant 0 : index
      %9 = vector.load %arg2[%8, %c0] : memref<64x128xf32, #tpu.memory_space<vmem>>, vector<1x128xf32>
      %10 = arith.index_cast %4 : i32 to index
      %c0_2 = arith.constant 0 : index
      %11 = vector.load %arg3[%10, %c0_2] : memref<16x128xf32, #tpu.memory_space<vmem>>, vector<1x128xf32>
      tpu.vector_store %arg3[%10, %c0_2], %9 {strides = array<i32>} : memref<16x128xf32, #tpu.memory_space<vmem>>, vector<1x128xf32>,
      %c1_i32_3 = arith.constant 1 : i32
      %12 = arith.addi %3, %c1_i32_3 : i32
      %13 = arith.addi %0, %12 : i32
      %14 = arith.index_cast %13 : i32 to index
      %15 = memref.load %arg1[%14] : memref<16xi32, #tpu.memory_space<smem>>
      %16 = arith.index_cast %15 : i32 to index
      %c0_4 = arith.constant 0 : index
      %17 = vector.load %arg2[%16, %c0_4] : memref<64x128xf32, #tpu.memory_space<vmem>>, vector<1x128xf32>
      %18 = arith.index_cast %12 : i32 to index
      %c0_5 = arith.constant 0 : index
      %19 = vector.load %arg3[%18, %c0_5] : memref<16x128xf32, #tpu.memory_space<vmem>>, vector<1x128xf32>
      tpu.vector_store %arg3[%18, %c0_5], %17 {strides = array<i32>} : memref<16x128xf32, #tpu.memory_space<vmem>>, vector<1x128xf32>,
      %c2_i32_6 = arith.constant 2 : i32
      %20 = arith.addi %3, %c2_i32_6 : i32
      %21 = arith.addi %0, %20 : i32
      %22 = arith.index_cast %21 : i32 to index
      %23 = memref.load %arg1[%22] : memref<16xi32, #tpu.memory_space<smem>>
      %24 = arith.index_cast %23 : i32 to index
      %c0_7 = arith.constant 0 : index
      %25 = vector.load %arg2[%24, %c0_7] : memref<64x128xf32, #tpu.memory_space<vmem>>, vector<1x128xf32>
      %26 = arith.index_cast %20 : i32 to index
      %c0_8 = arith.constant 0 : index
      %27 = vector.load %arg3[%26, %c0_8] : memref<16x128xf32, #tpu.memory_space<vmem>>, vector<1x128xf32>
      tpu.vector_store %arg3[%26, %c0_8], %25 {strides = array<i32>} : memref<16x128xf32, #tpu.memory_space<vmem>>, vector<1x128xf32>,
      %c3_i32 = arith.constant 3 : i32
      %28 = arith.addi %3, %c3_i32 : i32
      %29 = arith.addi %0, %28 : i32
      %30 = arith.index_cast %29 : i32 to index
      %31 = memref.load %arg1[%30] : memref<16xi32, #tpu.memory_space<smem>>
      %32 = arith.index_cast %31 : i32 to index
      %c0_9 = arith.constant 0 : index
      %33 = vector.load %arg2[%32, %c0_9] : memref<64x128xf32, #tpu.memory_space<vmem>>, vector<1x128xf32>
      %34 = arith.index_cast %28 : i32 to index
      %c0_10 = arith.constant 0 : index
      %35 = vector.load %arg3[%34, %c0_10] : memref<16x128xf32, #tpu.memory_space<vmem>>, vector<1x128xf32>
      tpu.vector_store %arg3[%34, %c0_10], %33 {strides = array<i32>} : memref<16x128xf32, #tpu.memory_space<vmem>>, vector<1x128xf32>,
      %c4_i32 = arith.constant 4 : i32
      %36 = arith.addi %3, %c4_i32 : i32
      %37 = arith.addi %0, %36 : i32
      %38 = arith.index_cast %37 : i32 to index
      %39 = memref.load %arg1[%38] : memref<16xi32, #tpu.memory_space<smem>>
      %40 = arith.index_cast %39 : i32 to index
      %c0_11 = arith.constant 0 : index
      %41 = vector.load %arg2[%40, %c0_11] : memref<64x128xf32, #tpu.memory_space<vmem>>, vector<1x128xf32>
      %42 = arith.index_cast %36 : i32 to index
      %c0_12 = arith.constant 0 : index
      %43 = vector.load %arg3[%42, %c0_12] : memref<16x128xf32, #tpu.memory_space<vmem>>, vector<1x128xf32>
      tpu.vector_store %arg3[%42, %c0_12], %41 {strides = array<i32>} : memref<16x128xf32, #tpu.memory_space<vmem>>, vector<1x128xf32>,
      %c5_i32 = arith.constant 5 : i32
      %44 = arith.addi %3, %c5_i32 : i32
      %45 = arith.addi %0, %44 : i32
      %46 = arith.index_cast %45 : i32 to index
      %47 = memref.load %arg1[%46] : memref<16xi32, #tpu.memory_space<smem>>
      %48 = arith.index_cast %47 : i32 to index
      %c0_13 = arith.constant 0 : index
      %49 = vector.load %arg2[%48, %c0_13] : memref<64x128xf32, #tpu.memory_space<vmem>>, vector<1x128xf32>
      %50 = arith.index_cast %44 : i32 to index
      %c0_14 = arith.constant 0 : index
      %51 = vector.load %arg3[%50, %c0_14] : memref<16x128xf32, #tpu.memory_space<vmem>>, vector<1x128xf32>
      tpu.vector_store %arg3[%50, %c0_14], %49 {strides = array<i32>} : memref<16x128xf32, #tpu.memory_space<vmem>>, vector<1x128xf32>,
      %c6_i32 = arith.constant 6 : i32
      %52 = arith.addi %3, %c6_i32 : i32
      %53 = arith.addi %0, %52 : i32
      %54 = arith.index_cast %53 : i32 to index
      %55 = memref.load %arg1[%54] : memref<16xi32, #tpu.memory_space<smem>>
      %56 = arith.index_cast %55 : i32 to index
      %c0_15 = arith.constant 0 : index
      %57 = vector.load %arg2[%56, %c0_15] : memref<64x128xf32, #tpu.memory_space<vmem>>, vector<1x128xf32>
      %58 = arith.index_cast %52 : i32 to index
      %c0_16 = arith.constant 0 : index
      %59 = vector.load %arg3[%58, %c0_16] : memref<16x128xf32, #tpu.memory_space<vmem>>, vector<1x128xf32>
      tpu.vector_store %arg3[%58, %c0_16], %57 {strides = array<i32>} : memref<16x128xf32, #tpu.memory_space<vmem>>, vector<1x128xf32>,
      %c7_i32 = arith.constant 7 : i32
      %60 = arith.addi %3, %c7_i32 : i32
      %61 = arith.addi %0, %60 : i32
      %62 = arith.index_cast %61 : i32 to index
      %63 = memref.load %arg1[%62] : memref<16xi32, #tpu.memory_space<smem>>
      %64 = arith.index_cast %63 : i32 to index
      %c0_17 = arith.constant 0 : index
      %65 = vector.load %arg2[%64, %c0_17] : memref<64x128xf32, #tpu.memory_space<vmem>>, vector<1x128xf32>
      %66 = arith.index_cast %60 : i32 to index
      %c0_18 = arith.constant 0 : index
      %67 = vector.load %arg3[%66, %c0_18] : memref<16x128xf32, #tpu.memory_space<vmem>>, vector<1x128xf32>
      tpu.vector_store %arg3[%66, %c0_18], %65 {strides = array<i32>} : memref<16x128xf32, #tpu.memory_space<vmem>>, vector<1x128xf32>,
    }
    %c2_i32_0 = arith.constant 2 : i32
    return
  }
  func.func @transform_0(%arg0: i32, %arg1: memref<16xi32, #tpu.memory_space<smem>>) -> (i32, i32) {
    %c0_i32 = arith.constant 0 : i32
    %c0_i32_0 = arith.constant 0 : i32
    %c0_i32_1 = arith.constant 0 : i32
    return %c0_i32, %c0_i32_0 : i32, i32
  }
  func.func @transform_1(%arg0: i32, %arg1: memref<16xi32, #tpu.memory_space<smem>>) -> (i32, i32) {
    %c0_i32 = arith.constant 0 : i32
    %c0_i32_0 = arith.constant 0 : i32
    return %arg0, %c0_i32 : i32, i32
  }
}

</mosaic_0001>

<bundles_post_ra>
// kernel: custom_embedding.1
= control target key start
LH: loop header
LB: loop body
LE: loop exit
PB: predicated region body
PF: predicated region fallthrough
CT: control target
= control target key end

     0   :  { %s284_s0 = inlined_call_operand.vmem [shape: s32[16], index: 0, kind: input, shape index: {}]   ;;  %s285_s1 = inlined_call_operand.hbm [shape: f32[64,128], index: 1, kind: input, shape index: {}]   ;;  %s286_s2 = inlined_call_operand.hbm [shape: f32[16,128], index: 2, kind: output, shape index: {}]  }
   0x1   :  { %s7_s11 = sshll.u32 %s284_s0, 4  ;;  %s8_s11 = int_to_ptr.vmem [resolvable:$true] %s7_s11 }
   0x2   :  { %s174_s12 = scalar_lea.vmem %s8_s11, 16  ;;  %p179_p1 = scmp.lt.s32.totalorder %s8_s11, %s8_s11 }
   0x3   :  { %p175_p0 = scmp.ne.s32.totalorder %s8_s11, %s174_s12  ;;  %p180_p2 = scmp.lt.s32.totalorder %s174_s12, %s174_s12 }
   0x5   :  { %p181_p3 = por %p180_p2, %p179_p1 }
   0x7   :  { %p182_p4 = pnand %p181_p3, %p175_p0 }
   0x9   :  { %185 = shalt.err (!%p182_p4)  }
   0xa   :  { %s240_s13 = smov [#allocation3]  }
   0xb   :  { %10 = dma.vmem_to_smem %s8_s11, 16, %s240_s13, [#allocation2] }
   0xc   :  { %230 = dma.done.wait [#allocation2], 16 }
   0xd   :  { %231 = vsyncadd [#allocation2], 4294967280 }
   0xe   :  { %12 = sfence }
   0xf   :  { %13 = vsyncpa [#allocation5], 0 }
  0x10   :  { %14 = vsyncpa [#allocation6], 0  ;;  %s241_s14 = smov [#allocation4]  }
  0x11   :  { %s20_s15 = sshll.u32 %s241_s14, 4  ;;  %s21_s15 = int_to_ptr.vmem [resolvable:$true] %s20_s15 }
  0x12   :  { %s194_s16 = scalar_lea.vmem %s21_s15, 1024  ;;  %p199_p6 = scmp.lt.s32.totalorder %s21_s15, %s21_s15 }
  0x13   :  { %p195_p5 = scmp.ne.s32.totalorder %s21_s15, %s194_s16  ;;  %p200_p7 = scmp.lt.s32.totalorder %s194_s16, %s194_s16 }
  0x15   :  { %p201_p8 = por %p200_p7, %p199_p6 }
  0x17   :  { %p202_p9 = pnand %p201_p8, %p195_p5 }
  0x19   :  { %205 = shalt.err (!%p202_p9)
}
  0x1a   :  { %s242_s0 = smov 128   ;;  %s243_s17 = smov 8  }
  0x1b   :  { %26 = dma.hbm_to_vmem [thread:$0]  %s285_s1, 1024, %s21_s15, [#allocation5], %s242_s0, %s242_s0, %s243_s17  }
  0x1c   :  { %232 = dma.done.wait [#allocation5], 1024  }
  0x1d   :  { %233 = vsyncadd [#allocation5], 4294966272  ;;  %s269_s20 = smov 0  }
  0x1e LB: > { %s146_s21 = sshll.u32 %s238_s20, 3  ;;  %s36_s20 = sadd.s32 1, %s238_s20   ;;  %s238_s20 = sphi %s269_s20, %s36_s20  }
  0x1f   : > { %s39_s22 = sld [smem:[#allocation3 + %s146_s21]]  ;;  %s44_s23 = sadd.s32 1, %s146_s21 }
  0x20   : > { %s51_s24 = sadd.s32 2, %s146_s21  ;;  %s46_s25 = sld [smem:[#allocation3 + %s44_s23]] }
  0x21   : > { %s58_s26 = sadd.s32 3, %s146_s21  ;;  %s53_s27 = sld [smem:[#allocation3 + %s51_s24]] }
  0x22   : > { %s65_s28 = sadd.s32 4, %s146_s21  ;;  %s60_s29 = sld [smem:[#allocation3 + %s58_s26]] }
  0x23   : > { %s72_s1 = sadd.s32 5, %s146_s21  ;;  %s67_s30 = sld [smem:[#allocation3 + %s65_s28]] }
  0x24   : > { %s79_s3 = sadd.s32 6, %s146_s21  ;;  %s74_s4 = sld [smem:[#allocation3 + %s72_s1]] }
  0x25   : > { %s40_s5 = scalar_lea.vmem [#allocation4], %s39_s22  ;;  %s81_s6 = sld [smem:[#allocation3 + %s79_s3]] }
  0x26   : > { %v41_v0 = vld [vmem:[%s40_s5] sm:$0x1]  ;;  %s86_s7 = sadd.s32 7, %s146_s21  ;;  %s42_s8 = scalar_lea.vmem [#allocation7], %s146_s21 }
  0x27   : > { %43 = vst [vmem:[%s42_s8] sm:$0x1] %v41_v0  ;;  %s88_s9 = sld [smem:[#allocation3 + %s86_s7]]  ;;  %s47_s10 = scalar_lea.vmem [#allocation4], %s46_s25 }
  0x28   : > { %v48_v1 = vld [vmem:[%s47_s10] sm:$0x1]  ;;  %s54_s11 = scalar_lea.vmem [#allocation4], %s53_s27  ;;  %s61_s12 = scalar_lea.vmem [#allocation4], %s60_s29 }
  0x29   : > { %148 = vst [vmem:[%s42_s8 + $0x1] sm:$0x1] %v48_v1  ;;  %v55_v2 = vld [vmem:[%s54_s11] sm:$0x1]  ;;  %s68_s13 = scalar_lea.vmem [#allocation4], %s67_s30  ;;  %p33_p10 = scmp.ge.s32.totalorder %s36_s20, 2  }
  0x2a   : > { %150 = vst [vmem:[%s42_s8 + $0x2] sm:$0x1] %v55_v2  ;;  %v62_v3 = vld [vmem:[%s61_s12] sm:$0x1]  ;;  %s75_s14 = scalar_lea.vmem [#allocation4], %s74_s4  ;;  %s244_s18 = smov (%p33_p10), [#allocation7]  }
  0x2b   : > { %152 = vst [vmem:[%s42_s8 + $0x3] sm:$0x1] %v62_v3  ;;  %v69_v4 = vld [vmem:[%s68_s13] sm:$0x1]  ;;  %s82_s15 = scalar_lea.vmem [#allocation4], %s81_s6  ;;  %35 = sbr.rel (!%p33_p10) target bundleno = 30 (0x1e), region = 51 }
  0x2c   : > { %154 = vst [vmem:[%s42_s8 + $0x4] sm:$0x1] %v69_v4  ;;  %v76_v5 = vld [vmem:[%s75_s14] sm:$0x1]  ;;  %s98_s19 = sshll.u32 (%p33_p10), %s244_s18, 4  ;;  %s99_s19 = int_to_ptr.vmem [resolvable:$true] %s98_s19 }
  0x2d   : > { %156 = vst [vmem:[%s42_s8 + $0x5] sm:$0x1] %v76_v5  ;;  %v83_v6 = vld [vmem:[%s82_s15] sm:$0x1]  ;;  %s89_s16 = scalar_lea.vmem [#allocation4], %s88_s9  ;;  %s206_s21 = scalar_lea.vmem (%p33_p10), %s99_s19, 256 }
  0x2e   : > { %158 = vst [vmem:[%s42_s8 + $0x6] sm:$0x1] %v83_v6  ;;  %v90_v7 = vld [vmem:[%s89_s16] sm:$0x1]  ;;  %p207_p11 = scmp.ne.s32.totalorder (%p33_p10), %s99_s19, %s206_s21  ;;  %p211_p12 = scmp.lt.s32.totalorder (%p33_p10), %s99_s19, %s99_s19 }
  0x2f   : > { %160 = vst [vmem:[%s42_s8 + $0x7] sm:$0x1] %v90_v7  ;;  %p212_p13 = scmp.lt.s32.totalorder (%p33_p10), %s206_s21, %s206_s21 }
  0x31   :  { %p213_p0 = por %p212_p13, %p211_p12 }
  0x33   :  { %p214_p1 = pnand %p213_p0, %p207_p11 }
  0x35   :  { %217 = shalt.err (!%p214_p1)
}
  0x36   :  { %104 = dma.vmem_to_hbm [thread:$0]  %s99_s19, 256, %s286_s2, [#allocation6], %s242_s0, %s242_s0, %s243_s17  }
  0x37   :  { %234 = dma.done.wait [#allocation6], 256  }
  0x38   :  { %235 = vsyncadd [#allocation6], 4294967040 }
  0x39   :  { %108 = vsyncpa [#allocation5], 1 }
  0x3a   :  { %109 = vsyncpa [#allocation6], 1 }

</bundles_post_ra>
